<compile_context>
chip_gen: v6e
topology: v6e:2x2x1
jax: 0.10.0
libtpu: 0.0.40
codegen_flags: <defaults>
</compile_context>

<pallas_src>
import jax
import jax.numpy as jnp
from jax.experimental import pallas as pl
from jax.experimental.pallas import tpu as pltpu


def _add_pos_kernel(x_ref, pos_ref, o_ref):
    # x_ref / o_ref: (TB, S*D) batch-tile; pos_ref: (1, S*D) resident block.
    # jnp broadcasting handles the (1, S*D) -> (TB, S*D) expansion on the VPU.
    o_ref[...] = x_ref[...] + pos_ref[...]


def learnable_positional_embeddings(x, pos_embedding,
                                    *, vmem_limit_bytes=32 * 1024 * 1024):
    """x: (B, S, D); pos_embedding: (1, S, D). Returns x + pos_embedding."""
    B, S, D = x.shape
    assert pos_embedding.shape == (1, S, D)

    # Explicit cast point (e.g. f32 params with bf16 activations).
    pos = pos_embedding.astype(x.dtype)

    # Lane-dense 2-D view: each row is one (seq, d_model) slice flattened.
    row = S * D
    x2 = x.reshape(B, row)
    pos2 = pos.reshape(1, row)

    # Size the batch tile against the VMEM budget:
    #   double-buffered x block + double-buffered out block (4 * TB * row)
    #   + one resident pos block (row), with ~25% headroom.
    itemsize = jnp.dtype(x.dtype).itemsize
    budget = int(vmem_limit_bytes * 0.75)
    tb_max = max(1, (budget - row * itemsize) // (4 * row * itemsize))

    if B <= tb_max:
        # Whole array fits comfortably: single block, no per-step overhead.
        tb = B
    else:
        # Chunk the batch; keep the sublane dim a multiple of 8 so the block
        # shape satisfies the (8, 128) constraint when tb != B.
        tb = max(8, (tb_max // 8) * 8)

    grid = (pl.cdiv(B, tb),)

    out2 = pl.pallas_call(
        _add_pos_kernel,
        out_shape=jax.ShapeDtypeStruct((B, row), x.dtype),
        grid_spec=pltpu.PrefetchScalarGridSpec(
            num_scalar_prefetch=0,
            grid=grid,
            in_specs=[
                # x: one batch chunk per grid step.
                pl.BlockSpec((tb, row), lambda b: (b, 0)),
                # pos: constant block index -> fetched once, stays resident.
                pl.BlockSpec((1, row), lambda b: (0, 0)),
            ],
            out_specs=pl.BlockSpec((tb, row), lambda b: (b, 0)),
        ),
        compiler_params=pltpu.CompilerParams(
            dimension_semantics=("parallel",),  # shards across TCs on v7x
            vmem_limit_bytes=vmem_limit_bytes,
        ),
    )(x2, pos2)

    return out2.reshape(B, S, D)


if __name__ == "__main__":
    # Small shapes consistent with the module: d_model=32, patchs=8 -> seq = 9
    B, patchs, d_model = 2, 8, 32
    S = patchs + 1

    key = jax.random.PRNGKey(0)
    kx, kp = jax.random.split(key)

    x = jax.random.normal(kx, (B, S, d_model), dtype=jnp.float32)
    # nn.Parameter(torch.zeros(1, patchs+1, d_model)) is learnable; use
    # deterministic non-zero values so the broadcast-add is exercised.
    pos_embedding = jax.random.normal(kp, (1, S, d_model), dtype=jnp.float32)

    out = learnable_positional_embeddings(x, pos_embedding)
    out = jax.block_until_ready(out)

    # Correctness check against plain-JAX reference (broadcast add).
    ref = x + pos_embedding
    assert out.shape == (B, S, d_model)
    assert out.dtype == x.dtype
    assert jnp.allclose(out, ref, atol=1e-6), "mismatch vs reference"

    print("KERNEL_OK")
</pallas_src>

<mosaic_0001>
module attributes {stable_mosaic.version = 11 : i64} {
  func.func @_add_pos_kernel(%arg0: i32, %arg1: memref<2x288xf32, #tpu.memory_space<vmem>>, %arg2: memref<1x288xf32, #tpu.memory_space<vmem>>, %arg3: memref<2x288xf32, #tpu.memory_space<vmem>>) attributes {dimension_semantics = [#tpu.dimension_semantics<parallel>], iteration_bounds = array<i64: 1>, scalar_prefetch = 0 : i64, scratch_operands = 0 : i64, tpu.core_type = #tpu.core_type<tc>, window_params = [{transform_indices = @transform_0, window_bounds = array<i64: 2, 288>}, {pipeline_mode = #tpu.pipeline_mode<synchronous>, transform_indices = @transform_1, window_bounds = array<i64: 1, 288>}, {transform_indices = @transform_2, window_bounds = array<i64: 2, 288>}]} {
    %c0 = arith.constant 0 : index
    %c0_0 = arith.constant 0 : index
    %0 = vector.load %arg1[%c0, %c0_0] : memref<2x288xf32, #tpu.memory_space<vmem>>, vector<2x288xf32>
    %c0_1 = arith.constant 0 : index
    %c0_2 = arith.constant 0 : index
    %1 = vector.load %arg2[%c0_1, %c0_2] : memref<1x288xf32, #tpu.memory_space<vmem>>, vector<1x288xf32>
    %2 = vector.broadcast %1 : vector<1x288xf32> to vector<2x288xf32>
    %3 = arith.addf %0, %2 : vector<2x288xf32>
    %c0_3 = arith.constant 0 : index
    %c0_4 = arith.constant 0 : index
    %4 = vector.load %arg3[%c0_3, %c0_4] : memref<2x288xf32, #tpu.memory_space<vmem>>, vector<2x288xf32>
    tpu.vector_store %arg3[%c0_3, %c0_4], %3 {strides = array<i32>} : memref<2x288xf32, #tpu.memory_space<vmem>>, vector<2x288xf32>,
    return
  }
  func.func @transform_0(%arg0: i32) -> (i32, i32) {
    %c0_i32 = arith.constant 0 : i32
    %c0_i32_0 = arith.constant 0 : i32
    return %arg0, %c0_i32 : i32, i32
  }
  func.func @transform_1(%arg0: i32) -> (i32, i32) {
    %c0_i32 = arith.constant 0 : i32
    %c0_i32_0 = arith.constant 0 : i32
    %c0_i32_1 = arith.constant 0 : i32
    return %c0_i32, %c0_i32_0 : i32, i32
  }
  func.func @transform_2(%arg0: i32) -> (i32, i32) {
    %c0_i32 = arith.constant 0 : i32
    %c0_i32_0 = arith.constant 0 : i32
    return %arg0, %c0_i32 : i32, i32
  }
}

</mosaic_0001>

<bundles_post_ra>
// kernel: tpu_custom_call.1
= control target key start
LH: loop header
LB: loop body
LE: loop exit
PB: predicated region body
PF: predicated region fallthrough
CT: control target
= control target key end

     0   :  { %7 = vsyncpa [#allocation3], 0  ;;  %s189_s0 = inlined_call_operand.hbm [shape: f32[2,288], index: 0, kind: input, shape index: {}]   ;;  %s190_s1 = inlined_call_operand.hbm [shape: f32[1,288], index: 1, kind: input, shape index: {}]   ;;  %s191_s2 = inlined_call_operand.hbm [shape: f32[2,288], index: 2, kind: output, shape index: {}]  }
   0x1   :  { %8 = vsyncpa [#allocation6], 0 }
   0x2   :  { %9 = vsyncpa [#allocation4], 0  ;;  %s161_s9 = smov [#allocation2]   ;;  %s162_s11 = smov [#allocation5]  }
   0x3   :  { %s16_s10 = sshll.u32 %s161_s9, 4  ;;  %s26_s12 = sshll.u32 %s162_s11, 4  ;;  %s17_s10 = int_to_ptr.vmem [resolvable:$true] %s16_s10  ;;  %s27_s12 = int_to_ptr.vmem [resolvable:$true] %s26_s12 }
   0x4   :  { %s103_s13 = scalar_lea.vmem %s17_s10, 96  ;;  %p108_p1 = scmp.lt.s32.totalorder %s17_s10, %s17_s10 }
   0x5   :  { %p104_p0 = scmp.ne.s32.totalorder %s17_s10, %s103_s13  ;;  %p109_p2 = scmp.lt.s32.totalorder %s103_s13, %s103_s13 }
   0x7   :  { %p110_p3 = por %p109_p2, %p108_p1 }
   0x9   :  { %p111_p4 = pnand %p110_p3, %p104_p0 }
   0xb   :  { %114 = shalt.err (!%p111_p4)
}
   0xc   :  { %19 = dma.hbm_to_vmem [thread:$0]  %s189_s0, 96, %s17_s10, [#allocation3]  }
   0xd   :  { %s123_s16 = scalar_lea.vmem %s27_s12, 48  ;;  %s127_s17 = scalar_lea.vmem %s27_s12, 64 }
   0xe   :  { %p124_p5 = scmp.ne.s32.totalorder %s27_s12, %s123_s16  ;;  %p128_p6 = scmp.lt.s32.totalorder %s27_s12, %s27_s12 }
   0xf   :  { %p129_p7 = scmp.lt.s32.totalorder %s127_s17, %s123_s16 }
  0x11   :  { %p130_p8 = por %p129_p7, %p128_p6 }
  0x13   :  { %p131_p9 = pnand %p130_p8, %p124_p5 }
  0x15   :  { %134 = shalt.err (!%p131_p9)
}
  0x16   :  { %29 = dma.hbm_to_vmem [thread:$0]  %s190_s1, 48, %s27_s12, [#allocation6]  }
  0x17   :  { %155 = dma.done.wait [#allocation3], 96  }
  0x18   :  { %156 = vsyncadd [#allocation3], 4294967200 }
  0x19   :  { %157 = dma.done.wait [#allocation6], 48  }
  0x1a   :  { %158 = vsyncadd [#allocation6], 4294967248  ;;  %v39_v0 = vlaneseq  ;;  %v163_v1 = vmov 1983009808   ;;  %v37_v9 = vld [vmem:[#allocation5] sm:$0x7] }
  0x1b   :  { %v53_v2 = vunpack.c.l.s4 %v163_v1  ;;  %vm69_vm0 = vcmask 1041408   ;;  %vm70_vm1 = vcmask 1043458   ;;  %vm72_vm3 = vcmask 259076   ;;  %v36_v16 = vld [vmem:[#allocation2] sm:$0x3f]  ;;  %s164_s0 = smov [#allocation7]  }
  0x1c   :  { %v40_v3 = vshrl.u32 %v39_v0, 7  ;;  %vm71_vm2 = vmor %vm70_vm1, %vm69_vm0  ;;  %s81_s1 = sshll.u32 %s164_s0, 4  ;;  %s82_s1 = int_to_ptr.vmem [resolvable:$true] %s81_s1 }
  0x1d   :  { %v54_v4 = vunpack.c.0.s8 %v53_v2  ;;  %vm73_vm4 = vmor %vm72_vm3, %vm71_vm2  ;;  %s135_s20 = scalar_lea.vmem %s82_s1, 96  ;;  %p140_p11 = scmp.lt.s32.totalorder %s82_s1, %s82_s1 }
  0x1e   :  { %v41_v5 = vsub.s32 0, %v40_v3  ;;  %v45_v6 = vsub.s32 1, %v40_v3  ;;  %v49_v7 = vsub.s32 2, %v40_v3  ;;  %p136_p10 = scmp.ne.s32.totalorder %s82_s1, %s135_s20  ;;  %p141_p12 = scmp.lt.s32.totalorder %s135_s20, %s135_s20 }
  0x1f   :  { %v57_v8 = vsub.s32 %v54_v4, %v40_v3 }
  0x20   :  { %v42_v10 = vrot.slane %v37_v9, %v41_v5  ;;  %v46_v11 = vrot.slane %v37_v9, %v45_v6  ;;  %v50_v12 = vrot.slane %v37_v9, %v49_v7  ;;  %p142_p13 = por %p141_p12, %p140_p11 }
  0x22   :  { %v51_v13 = vcombine.low %v42_v10, %v46_v11  ;;  %v65_v14 = vrot.slane %v50_v12, %v57_v8  ;;  %p143_p0 = pnand %p142_p13, %p136_p10 }
  0x24   :  { %v58_v15 = vrot.slane %v51_v13, %v57_v8 }
  0x26   :  { %v66_v17 = vcombine.low %v58_v15, %v65_v14 }
  0x28   :  { %v68_v18 = vadd.f32 %v66_v17, %v36_v16 }
  0x2a   :  { %74 = vst.msk [vmem:[#allocation7] sm:$0x3f] %vm73_vm4, %v68_v18 }
  0x2b   :  { %146 = shalt.err (!%p143_p0)
}
  0x2c   :  { %84 = dma.vmem_to_hbm [thread:$0]  %s82_s1, 96, %s191_s2, [#allocation4]  }
  0x2d   :  { %159 = dma.done.wait [#allocation4], 96  }
  0x2e   :  { %160 = vsyncadd [#allocation4], 4294967200 }
  0x2f   :  { %88 = vsyncpa [#allocation3], 1 }
  0x30   :  { %89 = vsyncpa [#allocation6], 1 }
  0x31   :  { %90 = vsyncpa [#allocation4], 1 }

</bundles_post_ra>
